<compile_context>
chip_gen: v5e
topology: v5e:2x2
jax: 0.10.0
libtpu: 0.0.40
codegen_flags: <defaults>
</compile_context>

<pallas_src>
import jax
import jax.numpy as jnp
from jax.experimental import pallas as pl
from jax.experimental.pallas import tpu as pltpu

# ----------------------------- model config ---------------------------------
N_UNITS_IN = 32
N_UNITS_HIDDEN = 64
N_LAYERS_HIDDEN = 2
NONLIN = "relu"
NONLIN_OUT = [("softmax", 5), ("none", 3)]          # sums to n_units_out
N_UNITS_OUT = sum(l for _, l in NONLIN_OUT)
GUMBEL_TAU = 0.2                                    # synthcity GumbelSoftmax default


def _apply_nonlin(name, x):
    if name == "relu":
        return jnp.maximum(x, 0.0)
    if name == "tanh":
        return jnp.tanh(x)
    if name == "sigmoid":
        return jax.nn.sigmoid(x)
    if name == "elu":
        return jnp.where(x > 0, x, jnp.exp(x) - 1.0)
    if name == "leaky_relu":
        return jnp.where(x > 0, x, 0.01 * x)
    if name == "none":
        return x
    raise ValueError(f"unsupported nonlin: {name}")


# ------------------------------ Pallas kernel --------------------------------
def make_decoder_kernel(n_layers_hidden, nonlin, nonlin_out, tau):
    inv_tau = float(1.0 / tau)

    def kernel(*refs):
        x_ref = refs[0]                 # [tile_m, n_in]   natural layout
        out_ref = refs[-1]              # [n_out, tile_m]  batch on lanes
        params = refs[1:-1]             # [w0, b0, w1, b1, ..., w_out, b_out]
                                        # w: [out, in] (torch layout), b: [out, 1]

        # --- hidden layer 0: fold the x transpose into the MXU contraction ---
        # (Dropout is identity in eval mode; bias add is a tiny [out,1] lane
        #  broadcast -- folding it into the matmul would require an in-kernel
        #  concat with non-tile-aligned shapes, so it is kept as a VPU add.)
        w0 = params[0][...]
        b0 = params[1][...]
        h = jax.lax.dot_general(
            w0, x_ref[...],
            dimension_numbers=(((1,), (1,)), ((), ())),
            preferred_element_type=jnp.float32) + b0          # [n_hidden, tile_m]
        h = _apply_nonlin(nonlin, h)                          # f32

        # --- remaining hidden layers: Dropout(identity) -> Linear -> nonlin ---
        for layer in range(1, n_layers_hidden):
            w = params[2 * layer][...]
            b = params[2 * layer + 1][...]
            h = jnp.dot(w, h.astype(w.dtype),
                        preferred_element_type=jnp.float32) + b
            h = _apply_nonlin(nonlin, h)

        # --- output Linear(n_hidden -> n_out) ---
        w_out = params[2 * n_layers_hidden][...]
        b_out = params[2 * n_layers_hidden + 1][...]
        y = jnp.dot(w_out, h.astype(w_out.dtype),
                    preferred_element_type=jnp.float32) + b_out   # [n_out, tile_m]

        # --- MultiActivationHead over the feature (sublane) axis ---
        # Static sublane slices: each head only touches its own rows, no
        # full-width masks / jnp.where passes.
        step = 0
        for act, length in nonlin_out:
            sl = y[step:step + length, :]
            if act == "softmax":
                # TODO(synk): synthcity's "softmax" head is GumbelSoftmax(tau=0.2);
                # the stochastic gumbel noise is omitted -> deterministic
                # temperature softmax (eval-mode expectation).
                logits = sl * inv_tau
                m = jnp.max(logits, axis=0, keepdims=True)
                e = jnp.exp(logits - m)
                s = jnp.sum(e, axis=0, keepdims=True)
                sl = e * pl.reciprocal(s, approx=True)
            elif act == "none":
                pass
            else:
                sl = _apply_nonlin(act, sl)
            out_ref[step:step + length, :] = sl.astype(out_ref.dtype)
            step += length

    return kernel


# ------------------------------ wrapper --------------------------------------
def _round_up(v, m):
    return ((v + m - 1) // m) * m


def _plan_batch(batch, tile_m=None, max_tile_m=8192):
    """Pick a lane-dense batch tile and the padded batch.

    - tile is a multiple of 128 (preferring multiples of 512 to fill the
      2x256-wide MXUs on v6e/v7x when it doesn't cost extra padding),
    - >=2 grid steps whenever padded batch >= 2048 (one block per v7x core),
    - tiles never shrink below ~1024 just to manufacture 2 steps.
    """
    padded = _round_up(max(batch, 1), 128)
    if tile_m is None:
        if padded >= 2 * 1024:
            half = -(-padded // 2)
            t512 = min(max_tile_m, _round_up(half, 512))
            t128 = min(max_tile_m, _round_up(half, 128))
            # prefer the 512-multiple tile unless it costs noticeably more pad
            tile_m = t512 if _round_up(padded, t512) <= _round_up(padded, t128) + 256 else t128
        else:
            tile_m = min(padded, max_tile_m)    # single tile for small batches
    else:
        tile_m = max(128, _round_up(int(tile_m), 128))
    padded = _round_up(padded, tile_m)
    return tile_m, padded


def fasd_decoder_forward(x, params, *, tile_m=None,
                         compute_dtype=jnp.bfloat16, out_dtype=jnp.float32):
    """x: [batch, n_units_in]; params: list of (W[out,in], b[out,1]) per Linear.

    compute_dtype (default bf16 on every TPU generation) is the streaming /
    MXU-operand dtype for x and W; all accumulation, biases and elementwise
    math stay f32.  Pass compute_dtype=jnp.float32 for an exact-f32 path.
    """
    batch, n_in = x.shape
    n_hidden = params[0][0].shape[0]
    n_out = params[-1][0].shape[0]
    n_layers_hidden = len(params) - 1

    tile_m, padded = _plan_batch(batch, tile_m)
    grid = (padded // tile_m,)

    # Natural [batch, n_in] layout: no HBM transpose. Cast to the streaming
    # dtype first (fewer bytes moved), then pad rows only if needed.
    x_c = x.astype(compute_dtype)
    if padded != batch:
        x_c = jnp.pad(x_c, ((0, padded - batch), (0, 0)))

    in_specs = [pl.BlockSpec((tile_m, n_in), lambda i: (i, 0))]
    flat = [x_c]
    for w, b in params:
        w = w.astype(compute_dtype)           # matmul operands in streaming dtype
        b = b.astype(jnp.float32)             # biases added post f32-accumulate
        # Constant index_map: the block never changes across the grid, so the
        # (tiny) parameter set is fetched to VMEM once - no per-step re-DMA.
        in_specs.append(pl.BlockSpec(w.shape, lambda i: (0, 0)))
        in_specs.append(pl.BlockSpec(b.shape, lambda i: (0, 0)))
        flat.extend([w, b])
    out_spec = pl.BlockSpec((n_out, tile_m), lambda i: (0, i))   # lane-dense

    kernel = make_decoder_kernel(n_layers_hidden, NONLIN, NONLIN_OUT, GUMBEL_TAU)

    # Advisory cost estimate: tiny custom call; let XLA schedule it tightly.
    flops = 2 * padded * (n_in * n_hidden
                          + (n_layers_hidden - 1) * n_hidden * n_hidden
                          + n_hidden * n_out)
    trans = padded * sum(l for a, l in NONLIN_OUT if a == "softmax")
    bytes_accessed = (sum(int(a.size) * a.dtype.itemsize for a in flat)
                      + padded * n_out * jnp.dtype(out_dtype).itemsize)

    cp_kwargs = dict(dimension_semantics=("parallel",))
    if tile_m > 8192:
        # v7x scoped-VMEM default is 32 MiB of its 64 MiB physical; very large
        # tiles need an explicit limit.
        cp_kwargs["vmem_limit_bytes"] = 48 << 20
    compiler_params = pltpu.CompilerParams(**cp_kwargs)

    out_t = pl.pallas_call(
        kernel,
        out_shape=jax.ShapeDtypeStruct((n_out, padded), out_dtype),
        grid_spec=pl.GridSpec(grid=grid, in_specs=in_specs, out_specs=out_spec),
        compiler_params=compiler_params,
        cost_estimate=pl.CostEstimate(flops=flops, transcendentals=trans,
                                      bytes_accessed=bytes_accessed),
    )(*flat)

    # Only the tiny [n_out, batch] output gets transposed back to [batch, n_out].
    return out_t[:, :batch].T


# --------------------------- parameter init ----------------------------------
def init_params(key, n_in, n_hidden, n_out, n_layers_hidden):
    """Deterministic init mimicking torch.nn.Linear default U(-1/sqrt(fan_in), .).

    Weights stored in torch layout: W [out_features, in_features], b [out, 1].
    """
    dims = [n_in] + [n_hidden] * n_layers_hidden + [n_out]
    params = []
    for fan_in, fan_out in zip(dims[:-1], dims[1:]):
        key, kw, kb = jax.random.split(key, 3)
        bound = 1.0 / jnp.sqrt(jnp.float32(fan_in))
        w = jax.random.uniform(kw, (fan_out, fan_in), jnp.float32, -bound, bound)
        b = jax.random.uniform(kb, (fan_out, 1), jnp.float32, -bound, bound)
        params.append((w, b))
    return params


# --------------------------- pure-JAX reference -------------------------------
def reference_forward(x, params):
    h = x.astype(jnp.float32)
    for w, b in params[:-1]:
        z = jnp.dot(h, w.T, preferred_element_type=jnp.float32) + b.reshape(1, -1)
        h = _apply_nonlin(NONLIN, z)
    w, b = params[-1]
    y = jnp.dot(h, w.T, preferred_element_type=jnp.float32) + b.reshape(1, -1)
    pieces, step = [], 0
    for act, length in NONLIN_OUT:
        sl = y[:, step:step + length]
        if act == "softmax":
            sl = jax.nn.softmax(sl / GUMBEL_TAU, axis=-1)
        elif act != "none":
            sl = _apply_nonlin(act, sl)
        pieces.append(sl)
        step += length
    return jnp.concatenate(pieces, axis=-1)


if __name__ == "__main__":
    key = jax.random.PRNGKey(0)
    kx, kp, kx2 = jax.random.split(key, 3)

    params = init_params(kp, N_UNITS_IN, N_UNITS_HIDDEN, N_UNITS_OUT, N_LAYERS_HIDDEN)

    # --- small batch (not a multiple of 128): wrapper pads / unpads ---
    batch = 16
    x = jax.random.normal(kx, (batch, N_UNITS_IN), dtype=jnp.float32)
    ref = reference_forward(x, params)

    # exact f32 streaming path (only deviation: approx EUP reciprocal in softmax)
    out_f32 = jax.block_until_ready(
        fasd_decoder_forward(x, params, compute_dtype=jnp.float32))
    assert out_f32.shape == (batch, N_UNITS_OUT), out_f32.shape
    assert jnp.allclose(out_f32, ref, atol=5e-3, rtol=5e-3), \
        float(jnp.max(jnp.abs(out_f32 - ref)))

    # default bf16 streaming path (all generations): f32 accumulate
    out_bf = jax.block_until_ready(fasd_decoder_forward(x, params))
    assert out_bf.shape == (batch, N_UNITS_OUT)
    assert bool(jnp.all(jnp.isfinite(out_bf)))
    assert jnp.allclose(out_bf, ref, atol=6e-2, rtol=6e-2), \
        float(jnp.max(jnp.abs(out_bf - ref)))

    # --- larger batch: exercises multi-step "parallel" grid / tile planner ---
    batch2 = 2500
    x2 = jax.random.normal(kx2, (batch2, N_UNITS_IN), dtype=jnp.float32)
    ref2 = reference_forward(x2, params)
    out2 = jax.block_until_ready(fasd_decoder_forward(x2, params))
    assert out2.shape == (batch2, N_UNITS_OUT)
    assert jnp.allclose(out2, ref2, atol=6e-2, rtol=6e-2), \
        float(jnp.max(jnp.abs(out2 - ref2)))

    print("KERNEL_OK")
</pallas_src>

<mosaic_0001>
module attributes {stable_mosaic.version = 11 : i64} {
  func.func @kernel(%arg0: i32, %arg1: memref<128x32xf32, #tpu.memory_space<vmem>>, %arg2: memref<64x32xf32, #tpu.memory_space<vmem>>, %arg3: memref<64x1xf32, #tpu.memory_space<vmem>>, %arg4: memref<64x64xf32, #tpu.memory_space<vmem>>, %arg5: memref<64x1xf32, #tpu.memory_space<vmem>>, %arg6: memref<8x64xf32, #tpu.memory_space<vmem>>, %arg7: memref<8x1xf32, #tpu.memory_space<vmem>>, %arg8: memref<8x128xf32, #tpu.memory_space<vmem>>) attributes {dimension_semantics = [#tpu.dimension_semantics<parallel>], iteration_bounds = array<i64: 1>, scalar_prefetch = 0 : i64, scratch_operands = 0 : i64, tpu.core_type = #tpu.core_type<tc>, window_params = [{transform_indices = @transform_0, window_bounds = array<i64: 128, 32>}, {pipeline_mode = #tpu.pipeline_mode<synchronous>, transform_indices = @transform_1, window_bounds = array<i64: 64, 32>}, {pipeline_mode = #tpu.pipeline_mode<synchronous>, transform_indices = @transform_2, window_bounds = array<i64: 64, 1>}, {pipeline_mode = #tpu.pipeline_mode<synchronous>, transform_indices = @transform_3, window_bounds = array<i64: 64, 64>}, {pipeline_mode = #tpu.pipeline_mode<synchronous>, transform_indices = @transform_4, window_bounds = array<i64: 64, 1>}, {pipeline_mode = #tpu.pipeline_mode<synchronous>, transform_indices = @transform_5, window_bounds = array<i64: 8, 64>}, {pipeline_mode = #tpu.pipeline_mode<synchronous>, transform_indices = @transform_6, window_bounds = array<i64: 8, 1>}, {transform_indices = @transform_7, window_bounds = array<i64: 8, 128>}]} {
    %c0 = arith.constant 0 : index
    %c0_0 = arith.constant 0 : index
    %0 = vector.load %arg2[%c0, %c0_0] : memref<64x32xf32, #tpu.memory_space<vmem>>, vector<64x32xf32>
    %c0_1 = arith.constant 0 : index
    %c0_2 = arith.constant 0 : index
    %1 = vector.load %arg3[%c0_1, %c0_2] : memref<64x1xf32, #tpu.memory_space<vmem>>, vector<64x1xf32>
    %c0_3 = arith.constant 0 : index
    %c0_4 = arith.constant 0 : index
    %2 = vector.load %arg1[%c0_3, %c0_4] : memref<128x32xf32, #tpu.memory_space<vmem>>, vector<128x32xf32>
    %cst = arith.constant dense<0.000000e+00> : vector<64x128xf32>
    %3 = tpu.matmul %0, %2, %cst {dimension_numbers = #tpu.dot_dimension_numbers<[1], [1], [0], [0], [0, 0, 1, 0], [], []>} : vector<64x32xf32>, vector<128x32xf32>, vector<64x128xf32> -> vector<64x128xf32>
    %4 = vector.broadcast %1 : vector<64x1xf32> to vector<64x128xf32>
    %5 = arith.addf %3, %4 : vector<64x128xf32>
    %cst_5 = arith.constant 0.000000e+00 : f32
    %6 = vector.broadcast %cst_5 : f32 to vector<64x128xf32>
    %7 = arith.maximumf %5, %6 : vector<64x128xf32>
    %c0_6 = arith.constant 0 : index
    %c0_7 = arith.constant 0 : index
    %8 = vector.load %arg4[%c0_6, %c0_7] : memref<64x64xf32, #tpu.memory_space<vmem>>, vector<64x64xf32>
    %c0_8 = arith.constant 0 : index
    %c0_9 = arith.constant 0 : index
    %9 = vector.load %arg5[%c0_8, %c0_9] : memref<64x1xf32, #tpu.memory_space<vmem>>, vector<64x1xf32>
    %cst_10 = arith.constant dense<0.000000e+00> : vector<64x128xf32>
    %10 = tpu.matmul %8, %7, %cst_10 {dimension_numbers = #tpu.dot_dimension_numbers<[1], [0], [0], [1], [0, 0, 1, 1], [], []>} : vector<64x64xf32>, vector<64x128xf32>, vector<64x128xf32> -> vector<64x128xf32>
    %11 = vector.broadcast %9 : vector<64x1xf32> to vector<64x128xf32>
    %12 = arith.addf %10, %11 : vector<64x128xf32>
    %cst_11 = arith.constant 0.000000e+00 : f32
    %13 = vector.broadcast %cst_11 : f32 to vector<64x128xf32>
    %14 = arith.maximumf %12, %13 : vector<64x128xf32>
    %c0_12 = arith.constant 0 : index
    %c0_13 = arith.constant 0 : index
    %15 = vector.load %arg6[%c0_12, %c0_13] : memref<8x64xf32, #tpu.memory_space<vmem>>, vector<8x64xf32>
    %c0_14 = arith.constant 0 : index
    %c0_15 = arith.constant 0 : index
    %16 = vector.load %arg7[%c0_14, %c0_15] : memref<8x1xf32, #tpu.memory_space<vmem>>, vector<8x1xf32>
    %cst_16 = arith.constant dense<0.000000e+00> : vector<8x128xf32>
    %17 = tpu.matmul %15, %14, %cst_16 {dimension_numbers = #tpu.dot_dimension_numbers<[1], [0], [0], [1], [0, 0, 1, 1], [], []>} : vector<8x64xf32>, vector<64x128xf32>, vector<8x128xf32> -> vector<8x128xf32>
    %18 = vector.broadcast %16 : vector<8x1xf32> to vector<8x128xf32>
    %19 = arith.addf %17, %18 : vector<8x128xf32>
    %20 = vector.extract_strided_slice %19 {offsets = [0, 0], sizes = [5, 128], strides = [1, 1]} : vector<8x128xf32> to vector<5x128xf32>
    %cst_17 = arith.constant 5.000000e+00 : f32
    %21 = vector.broadcast %cst_17 : f32 to vector<5x128xf32>
    %22 = arith.mulf %20, %21 : vector<5x128xf32>
    %cst_18 = arith.constant dense<0xFF800000> : vector<128xf32>
    %23 = vector.multi_reduction <maximumf>, %22, %cst_18 [0] : vector<5x128xf32> to vector<128xf32>
    %24 = vector.shape_cast %23 : vector<128xf32> to vector<1x128xf32>
    %25 = vector.broadcast %24 : vector<1x128xf32> to vector<5x128xf32>
    %26 = arith.subf %22, %25 : vector<5x128xf32>
    %27 = math.exp %26 : vector<5x128xf32>
    %cst_19 = arith.constant dense<0.000000e+00> : vector<128xf32>
    %28 = vector.multi_reduction <add>, %27, %cst_19 [0] : vector<5x128xf32> to vector<128xf32>
    %29 = vector.shape_cast %28 : vector<128xf32> to vector<1x128xf32>
    %30 = tpu.reciprocal %29 {approx = true} : vector<1x128xf32> -> vector<1x128xf32>
    %31 = vector.broadcast %30 : vector<1x128xf32> to vector<5x128xf32>
    %32 = arith.mulf %27, %31 : vector<5x128xf32>
    %c0_20 = arith.constant 0 : index
    %c0_21 = arith.constant 0 : index
    %33 = vector.load %arg8[%c0_20, %c0_21] : memref<8x128xf32, #tpu.memory_space<vmem>>, vector<5x128xf32>
    tpu.vector_store %arg8[%c0_20, %c0_21], %32 {strides = array<i32>} : memref<8x128xf32, #tpu.memory_space<vmem>>, vector<5x128xf32>,
    %34 = vector.extract_strided_slice %19 {offsets = [5, 0], sizes = [3, 128], strides = [1, 1]} : vector<8x128xf32> to vector<3x128xf32>
    %c5 = arith.constant 5 : index
    %c0_22 = arith.constant 0 : index
    %35 = vector.load %arg8[%c5, %c0_22] : memref<8x128xf32, #tpu.memory_space<vmem>>, vector<3x128xf32>
    tpu.vector_store %arg8[%c5, %c0_22], %34 {strides = array<i32>} : memref<8x128xf32, #tpu.memory_space<vmem>>, vector<3x128xf32>,
    return
  }
  func.func @transform_0(%arg0: i32) -> (i32, i32) {
    %c0_i32 = arith.constant 0 : i32
    %c0_i32_0 = arith.constant 0 : i32
    return %arg0, %c0_i32 : i32, i32
  }
  func.func @transform_1(%arg0: i32) -> (i32, i32) {
    %c0_i32 = arith.constant 0 : i32
    %c0_i32_0 = arith.constant 0 : i32
    %c0_i32_1 = arith.constant 0 : i32
    return %c0_i32, %c0_i32_0 : i32, i32
  }
  func.func @transform_2(%arg0: i32) -> (i32, i32) {
    %c0_i32 = arith.constant 0 : i32
    %c0_i32_0 = arith.constant 0 : i32
    %c0_i32_1 = arith.constant 0 : i32
    return %c0_i32, %c0_i32_0 : i32, i32
  }
  func.func @transform_3(%arg0: i32) -> (i32, i32) {
    %c0_i32 = arith.constant 0 : i32
    %c0_i32_0 = arith.constant 0 : i32
    %c0_i32_1 = arith.constant 0 : i32
    return %c0_i32, %c0_i32_0 : i32, i32
  }
  func.func @transform_4(%arg0: i32) -> (i32, i32) {
    %c0_i32 = arith.constant 0 : i32
    %c0_i32_0 = arith.constant 0 : i32
    %c0_i32_1 = arith.constant 0 : i32
    return %c0_i32, %c0_i32_0 : i32, i32
  }
  func.func @transform_5(%arg0: i32) -> (i32, i32) {
    %c0_i32 = arith.constant 0 : i32
    %c0_i32_0 = arith.constant 0 : i32
    %c0_i32_1 = arith.constant 0 : i32
    return %c0_i32, %c0_i32_0 : i32, i32
  }
  func.func @transform_6(%arg0: i32) -> (i32, i32) {
    %c0_i32 = arith.constant 0 : i32
    %c0_i32_0 = arith.constant 0 : i32
    %c0_i32_1 = arith.constant 0 : i32
    return %c0_i32, %c0_i32_0 : i32, i32
  }
  func.func @transform_7(%arg0: i32) -> (i32, i32) {
    %c0_i32 = arith.constant 0 : i32
    %c0_i32_0 = arith.constant 0 : i32
    return %c0_i32, %arg0 : i32, i32
  }
}

</mosaic_0001>

<bundles_post_ra>
// kernel: tpu_custom_call.1
= control target key start
LH: loop header
LB: loop body
LE: loop exit
PB: predicated region body
PF: predicated region fallthrough
CT: control target
= control target key end

     0   :  { %vm99_vm0 = vcmask 261120   ;;  %s780_s0 = inlined_call_operand.vmem [shape: f32[128,32], index: 0, kind: input, shape index: {}]   ;;  %s781_s1 = inlined_call_operand.vmem [shape: f32[64,32], index: 1, kind: input, shape index: {}]   ;;  %s782_s2 = inlined_call_operand.vmem [shape: f32[64,1], index: 2, kind: input, shape index: {}]   ;;  %s783_s3 = inlined_call_operand.vmem [shape: f32[64,64], index: 3, kind: input, shape index: {}]   ;;  %s784_s4 = inlined_call_operand.vmem [shape: f32[64,1], index: 4, kind: input, shape index: {}]   ;;  %s785_s5 = inlined_call_operand.vmem [shape: f32[8,64], index: 5, kind: input, shape index: {}]   ;;  %s786_s6 = inlined_call_operand.vmem [shape: f32[8,1], index: 6, kind: input, shape index: {}]   ;;  %s787_s7 = inlined_call_operand.hbm [shape: f32[8,128], index: 7, kind: output, shape index: {}]  }
   0x1   :  { %v58_v0 = vld [vmem:[%s780_s0 + $0x78] sm:$0xff]  ;;  %v57_v1 = vld [vmem:[%s780_s0 + $0x70] sm:$0xff] }
   0x2   :  { %454 = vmatpush.xpose.msk.msra.mxu3 %vm99_vm0, %v58_v0  ;;  %453 = vmatpush.xpose.msk.msra.mxu2 %vm99_vm0, %v58_v0 }
   0x3   :  { %420 = vmatpush.xpose.msk.msra.mxu0 %vm99_vm0, %v58_v0 }
   0x4   :  { %12 = vsyncpa [#allocation3], 0  ;;  %v56_v2 = vld [vmem:[%s780_s0 + $0x68] sm:$0xff]  ;;  %v55_v3 = vld [vmem:[%s780_s0 + $0x60] sm:$0xff]  ;;  %v520_v7 = vmov 0   ;;  %vm277_vm1 = vcmask 523264  }
   0x5   :  { %v54_v4 = vld [vmem:[%s780_s0 + $0x58] sm:$0xff]  ;;  %v53_v6 = vld [vmem:[%s780_s0 + $0x50] sm:$0xff]  ;;  %487 = vset.pattern.permute.xlu0 %v520_v7  ;;  %488 = vset.pattern.permute.xlu1 %v520_v7  ;;  %v40_v8 = vld [vmem:[%s782_s2 + $0x28] sm:$0xff]  ;;  %vm382_vm2 = vcmask 1044480   ;;  %s411_s26 = sshll.u32 %s787_s7, 4  ;;  %s412_s26 = int_to_ptr.hbm [resolvable:$true] %s411_s26 }
   0x6   :  { %456 = vmatpush.xpose.msk.msra.mxu3 %vm99_vm0, %v57_v1  ;;  %455 = vmatpush.xpose.msk.msra.mxu2 %vm99_vm0, %v57_v1  ;;  %v42_v5 = vld [vmem:[%s782_s2 + $0x38] sm:$0xff]  ;;  %v52_v9 = vld [vmem:[%s780_s0 + $0x48] sm:$0xff]  ;;  %v41_v10 = vld [vmem:[%s782_s2 + $0x30] sm:$0xff] }
   0x7   :  { %421 = vmatpush.xpose.msk.msra.mxu0 %vm99_vm0, %v57_v1  ;;  %96 = vperm.xlu0 %487, %v42_v5   ;;  %v51_v11 = vld [vmem:[%s780_s0 + $0x40] sm:$0xff]  ;;  %v50_v13 = vld [vmem:[%s780_s0 + $0x38] sm:$0xff]  ;;  %v36_v14 = vld [vmem:[%s782_s2 + $0x8] sm:$0xff] }
   0x8   :  { %489 = vset.pattern.permute.xlu2 %v520_v7  ;;  %86 = vperm.xlu1 %488, %v40_v8   ;;  %v39_v12 = vld [vmem:[%s782_s2 + $0x20] sm:$0xff]  ;;  %v49_v15 = vld [vmem:[%s780_s0 + $0x30] sm:$0xff]  ;;  %v48_v17 = vld [vmem:[%s780_s0 + $0x28] sm:$0xff] }
   0x9   :  { %v35_v16 = vld [vmem:[%s782_s2] sm:$0xff]  ;;  %v235_v18 = vld [vmem:[%s784_s4 + $0x30] sm:$0xff]  ;;  %v234_v20 = vld [vmem:[%s784_s4 + $0x28] sm:$0xff] }
   0xa   :  { %458 = vmatpush.xpose.msk.msra.mxu3 %vm99_vm0, %v56_v2  ;;  %457 = vmatpush.xpose.msk.msra.mxu2 %vm99_vm0, %v56_v2  ;;  %v47_v19 = vld [vmem:[%s780_s0 + $0x20] sm:$0xff]  ;;  %v46_v21 = vld [vmem:[%s780_s0 + $0x18] sm:$0xff]  ;;  %v45_v24 = vld [vmem:[%s780_s0 + $0x10] sm:$0xff] }
   0xb   :  { %422 = vmatpush.xpose.msk.msra.mxu0 %vm99_vm0, %v56_v2  ;;  %v232_v22 = vld [vmem:[%s784_s4 + $0x18] sm:$0xff]  ;;  %v231_v25 = vld [vmem:[%s784_s4 + $0x10] sm:$0xff]  ;;  %v44_v26 = vld [vmem:[%s780_s0 + $0x8] sm:$0xff] }
   0xc   :  { %v38_v23 = vld [vmem:[%s782_s2 + $0x18] sm:$0xff]  ;;  %v37_v27 = vld [vmem:[%s782_s2 + $0x10] sm:$0xff]  ;;  %v229_v28 = vld [vmem:[%s784_s4] sm:$0xff] }
   0xd   :  { %76 = vperm.xlu2 %489, %v38_v23   ;;  %v43_v29 = vld [vmem:[%s780_s0] sm:$0xff]  ;;  %v32_v31 = vld [vmem:[%s781_s1 + $0x28] sm:$0xff]  ;;  %v30_v32 = vld [vmem:[%s781_s1 + $0x18] sm:$0xff] }
   0xe   :  { %460 = vmatpush.xpose.msk.msra.mxu3 %vm99_vm0, %v55_v3  ;;  %459 = vmatpush.xpose.msk.msra.mxu2 %vm99_vm0, %v55_v3  ;;  %v352_v30 = vld [vmem:[%s786_s6] sm:$0xff]  ;;  %v236_v34 = vld [vmem:[%s784_s4 + $0x38] sm:$0xff]  ;;  %v33_v35 = vld [vmem:[%s781_s1 + $0x30] sm:$0xff] }
   0xf   :  { %423 = vmatpush.xpose.msk.msra.mxu0 %vm99_vm0, %v55_v3  ;;  %91 = vperm.xlu0 %487, %v41_v10   ;;  %v27_v33 = vld [vmem:[%s781_s1] sm:$0xff]  ;;  %v28_v37 = vld [vmem:[%s781_s1 + $0x8] sm:$0xff]  ;;  %v34_v39 = vld [vmem:[%s781_s1 + $0x38] sm:$0xff] }
  0x10   :  { %81 = vperm.xlu1 %488, %v39_v12   ;;  %v31_v36 = vld [vmem:[%s781_s1 + $0x20] sm:$0xff]  ;;  %v29_v40 = vld [vmem:[%s781_s1 + $0x10] sm:$0xff]  ;;  %v230_v41 = vld [vmem:[%s784_s4 + $0x8] sm:$0xff] }
  0x11   :  { %v233_v38 = vld [vmem:[%s784_s4 + $0x20] sm:$0xff]  ;;  %v223_v12 = vld [vmem:[%s783_s3 + $0x10] sm:$0xff] }
  0x12   :  { %462 = vmatpush.xpose.msk.msra.mxu3 %vm99_vm0, %v54_v4  ;;  %461 = vmatpush.xpose.msk.msra.mxu2 %vm99_vm0, %v54_v4  ;;  %v221_v10 = vld [vmem:[%s783_s3] sm:$0xff] }
  0x13   :  { %424 = vmatpush.xpose.msk.msra.mxu0 %vm99_vm0, %v54_v4 }
  0x15   :  { %71 = vperm.xlu2 %489, %v37_v27  }
  0x16   :  { %464 = vmatpush.xpose.msk.msra.mxu3 %vm99_vm0, %v53_v6  ;;  %463 = vmatpush.xpose.msk.msra.mxu2 %vm99_vm0, %v53_v6 }
  0x17   :  { %425 = vmatpush.xpose.msk.msra.mxu0 %vm99_vm0, %v53_v6  ;;  %66 = vperm.xlu0 %487, %v36_v14   ;;  %v225_v14 = vld [vmem:[%s783_s3 + $0x20] sm:$0xff] }
  0x18   :  { %61 = vperm.xlu1 %488, %v35_v16   ;;  %v227_v16 = vld [vmem:[%s783_s3 + $0x30] sm:$0xff] }
  0x1a   :  { %466 = vmatpush.xpose.msk.msra.mxu3 %vm99_vm0, %v52_v9  ;;  %465 = vmatpush.xpose.msk.msra.mxu2 %vm99_vm0, %v52_v9 }
  0x1b   :  { %426 = vmatpush.xpose.msk.msra.mxu0 %vm99_vm0, %v52_v9 }
  0x1d   :  { %274 = vperm.xlu2 %489, %v236_v34  }
  0x1e   :  { %468 = vmatpush.xpose.msk.msra.mxu3 %vm99_vm0, %v51_v11  ;;  %467 = vmatpush.xpose.msk.msra.mxu2 %vm99_vm0, %v51_v11 }
  0x1f   :  { %427 = vmatpush.xpose.msk.msra.mxu0 %vm99_vm0, %v51_v11  ;;  %269 = vperm.xlu0 %487, %v235_v18   ;;  %v222_v11 = vld [vmem:[%s783_s3 + $0x8] sm:$0xff] }
  0x20   :  { %264 = vperm.xlu1 %488, %v234_v20  }
  0x22   :  { %470 = vmatpush.xpose.msk.msra.mxu3 %vm99_vm0, %v50_v13  ;;  %469 = vmatpush.xpose.msk.msra.mxu2 %vm99_vm0, %v50_v13 }
  0x23   :  { %428 = vmatpush.xpose.msk.msra.mxu0 %vm99_vm0, %v50_v13  ;;  %v224_v13 = vld [vmem:[%s783_s3 + $0x18] sm:$0xff] }
  0x25   :  { %259 = vperm.xlu2 %489, %v233_v38  }
  0x26   :  { %472 = vmatpush.xpose.msk.msra.mxu3 %vm99_vm0, %v49_v15  ;;  %471 = vmatpush.xpose.msk.msra.mxu2 %vm99_vm0, %v49_v15 }
  0x27   :  { %429 = vmatpush.xpose.msk.msra.mxu0 %vm99_vm0, %v49_v15  ;;  %254 = vperm.xlu0 %487, %v232_v22   ;;  %v226_v15 = vld [vmem:[%s783_s3 + $0x28] sm:$0xff] }
  0x28   :  { %249 = vperm.xlu1 %488, %v231_v25  }
  0x2a   :  { %474 = vmatpush.xpose.msk.msra.mxu3 %vm99_vm0, %v48_v17  ;;  %473 = vmatpush.xpose.msk.msra.mxu2 %vm99_vm0, %v48_v17 }
  0x2b   :  { %430 = vmatpush.xpose.msk.msra.mxu0 %vm99_vm0, %v48_v17  ;;  %v228_v17 = vld [vmem:[%s783_s3 + $0x38] sm:$0xff] }
  0x2d   :  { %244 = vperm.xlu2 %489, %v230_v41  }
  0x2e   :  { %476 = vmatpush.xpose.msk.msra.mxu3 %vm99_vm0, %v47_v19  ;;  %475 = vmatpush.xpose.msk.msra.mxu2 %vm99_vm0, %v47_v19 }
  0x2f   :  { %431 = vmatpush.xpose.msk.msra.mxu0 %vm99_vm0, %v47_v19  ;;  %239 = vperm.xlu0 %487, %v229_v28  }
  0x30   :  { %355 = vperm.xlu1 %488, %v352_v30  }
  0x32   :  { %478 = vmatpush.xpose.msk.msra.mxu3 %vm99_vm0, %v46_v21  ;;  %477 = vmatpush.xpose.msk.msra.mxu2 %vm99_vm0, %v46_v21 }
  0x33   :  { %432 = vmatpush.xpose.msk.msra.mxu0 %vm99_vm0, %v46_v21 }
  0x36   :  { %480 = vmatpush.xpose.msk.msra.mxu3 %vm99_vm0, %v45_v24  ;;  %479 = vmatpush.xpose.msk.msra.mxu2 %vm99_vm0, %v45_v24 }
  0x37   :  { %433 = vmatpush.xpose.msk.msra.mxu0 %vm99_vm0, %v45_v24 }
  0x3a   :  { %482 = vmatpush.xpose.msk.msra.mxu3 %vm99_vm0, %v44_v26  ;;  %481 = vmatpush.xpose.msk.msra.mxu2 %vm99_vm0, %v44_v26 }
  0x3b   :  { %434 = vmatpush.xpose.msk.msra.mxu0 %vm99_vm0, %v44_v26 }
  0x3e   :  { %484 = vmatpush.xpose.msk.msra.mxu3 %vm99_vm0, %v43_v29  ;;  %483 = vmatpush.xpose.msk.msra.mxu2 %vm99_vm0, %v43_v29 }
  0x3f   :  { %435 = vmatpush.xpose.msk.msra.mxu0 %vm99_vm0, %v43_v29 }
  0x41   :  { %441 = vmatmul.msk.f32.vlgmr.msra.gmra.mxu3 %vm99_vm0, %v32_v31  ;;  %439 = vmatmul.msk.f32.vlgmr.msra.gmra.mxu2 %vm99_vm0, %v30_v32 }
  0x42   :  { %436 = vmatmul.msk.f32.vlgmr.msra.gmra.mxu0 %vm99_vm0, %v27_v33 }
  0x49   :  { %442 = vmatmul.msk.f32.gmra.mxu3 %vm99_vm0, %v33_v35  ;;  %440 = vmatmul.msk.f32.gmra.mxu2 %vm99_vm0, %v31_v36 }
  0x4a   :  { %437 = vmatmul.msk.f32.gmra.mxu0 %vm99_vm0, %v28_v37 }
  0x51   :  { %443 = vmatmul.msk.f32.gmra.mxu3 %vm99_vm0, %v34_v39 }
  0x52   :  { %438 = vmatmul.msk.f32.gmra.mxu0 %vm99_vm0, %v29_v40 }
  0x67   :  { %v77_v49 = vpop.permute.xlu2 %76 }
  0x6f   :  { %v72_v63 = vpop.permute.xlu2 %71 }
  0x77   :  { %v275_v24 = vpop.permute.xlu2 %274 }
  0x79   :  { %v97_v44 = vpop.permute.xlu0 %96 }
  0x7a   :  { %v87_v45 = vpop.permute.xlu1 %86 }
  0x7f   :  { %v260_v28 = vpop.permute.xlu2 %259 }
  0x81   :  { %v92_v50 = vpop.permute.xlu0 %91 }
  0x82   :  { %v82_v54 = vpop.permute.xlu1 %81 }
  0x89   :  { %v67_v2 = vpop.permute.xlu0 %66 }
  0x8a   :  { %v62_v5 = vpop.permute.xlu1 %61 }
  0x91   :  { %v270_v25 = vpop.permute.xlu0 %269 }
  0x92   :  { %v265_v27 = vpop.permute.xlu1 %264 }
  0x99   :  { %v255_v32 = vpop.permute.xlu0 %254 }
  0x9a   :  { %v250_v39 = vpop.permute.xlu1 %249 }
  0xbf   :  { %v189_v43 = vpop.f32.mrf.mxu0 }
  0xc0   :  { %v190_v6 = vadd.f32 %v189_v43, %v62_v5 }
  0xc2   :  { %v213_v9 = vmax.f32 %v190_v6, 0.0 }
  0xc4   :  { %v204_v42 = vpop.f32.mrf.mxu3  ;;  %v198_v46 = vpop.f32.mrf.mxu2 }
  0xc5   :  { %v205_v56 = vadd.f32 %v204_v42, %v87_v45  ;;  %v199_v62 = vadd.f32 %v198_v46, %v77_v49  ;;  %v245_v42 = vpop.permute.xlu2 %244  ;;  %v240_v45 = vpop.permute.xlu0 %239 }
  0xc7   :  { %v192_v48 = vpop.f32.mrf.mxu0  ;;  %v218_v61 = vmax.f32 %v205_v56, 0.0  ;;  %v216_v3 = vmax.f32 %v199_v62, 0.0 }
  0xc8   :  { %v193_v4 = vadd.f32 %v192_v48, %v67_v2 }
  0xca   :  { %v214_v8 = vmax.f32 %v193_v4, 0.0 }
  0xcc   :  { %v207_v47 = vpop.f32.mrf.mxu3  ;;  %v201_v55 = vpop.f32.mrf.mxu2 }
  0xcd   :  { %v208_v52 = vadd.f32 %v207_v47, %v92_v50  ;;  %v202_v59 = vadd.f32 %v201_v55, %v82_v54  ;;  %v351_v50 = vld [vmem:[%s785_s5] sm:$0xff]  ;;  %s521_s5 = smov [#allocation2]  }
  0xce   :  { %s409_s23 = sshll.u32 %s521_s5, 4  ;;  %s410_s23 = int_to_ptr.vmem [resolvable:$true] %s409_s23 }
  0xcf   :  { %v219_v58 = vmax.f32 %v208_v52, 0.0  ;;  %v195_v60 = vpop.f32.mrf.mxu0  ;;  %v217_v0 = vmax.f32 %v202_v59, 0.0 }
  0xd0   :  { %v196_v1 = vadd.f32 %v195_v60, %v72_v63 }
  0xd2   :  { %v215_v7 = vmax.f32 %v196_v1, 0.0 }
  0xd4   :  { %v210_v51 = vpop.f32.mrf.mxu3 }
  0xd5   :  { %v211_v53 = vadd.f32 %v210_v51, %v97_v44  ;;  %v356_v51 = vpop.permute.xlu1 %355 }
  0xd7   :  { %v220_v57 = vmax.f32 %v211_v53, 0.0 }
  0xd9   :  { %310 = vmatpush.msra.mxu1 %v220_v57 }
  0xdb   :  { %311 = vmatpush.msra.mxu1 %v219_v58 }
  0xdd   :  { %312 = vmatpush.msra.mxu1 %v218_v61 }
  0xdf   :  { %313 = vmatpush.msra.mxu1 %v217_v0 }
  0xe1   :  { %314 = vmatpush.msra.mxu1 %v216_v3 }
  0xe3   :  { %315 = vmatpush.msra.mxu1 %v215_v7 }
  0xe5   :  { %316 = vmatpush.msra.mxu1 %v214_v8 }
  0xe7   :  { %317 = vmatpush.msra.mxu1 %v213_v9 }
  0xe8   :  { %444 = vmatmul.msk.f32.vlgmr.msra.gmra.mxu1 %vm277_vm1, %v221_v10 }
  0xf0   :  { %445 = vmatmul.msk.f32.gmra.mxu1 %vm277_vm1, %v222_v11 }
  0xf8   :  { %446 = vmatmul.msk.f32.gmra.mxu1 %vm277_vm1, %v223_v12 }
 0x100   :  { %447 = vmatmul.msk.f32.gmra.mxu1 %vm277_vm1, %v224_v13 }
 0x108   :  { %448 = vmatmul.msk.f32.gmra.mxu1 %vm277_vm1, %v225_v14 }
 0x110   :  { %449 = vmatmul.msk.f32.gmra.mxu1 %vm277_vm1, %v226_v15 }
 0x118   :  { %450 = vmatmul.msk.f32.gmra.mxu1 %vm277_vm1, %v227_v16 }
 0x120   :  { %451 = vmatmul.msk.f32.gmra.mxu1 %vm277_vm1, %v228_v17 }
 0x165   :  { %v319_v18 = vpop.f32.mrf.mxu1 }
 0x166   :  { %v320_v46 = vadd.f32 %v319_v18, %v240_v45 }
 0x168   :  { %v343_v49 = vmax.f32 %v320_v46, 0.0 }
 0x16d   :  { %v322_v19 = vpop.f32.mrf.mxu1 }
 0x16e   :  { %v323_v43 = vadd.f32 %v322_v19, %v245_v42 }
 0x170   :  { %v344_v48 = vmax.f32 %v323_v43, 0.0 }
 0x175   :  { %v325_v20 = vpop.f32.mrf.mxu1 }
 0x176   :  { %v326_v40 = vadd.f32 %v325_v20, %v250_v39 }
 0x178   :  { %v345_v47 = vmax.f32 %v326_v40, 0.0 }
 0x17d   :  { %v328_v21 = vpop.f32.mrf.mxu1 }
 0x17e   :  { %v329_v37 = vadd.f32 %v328_v21, %v255_v32 }
 0x180   :  { %v346_v44 = vmax.f32 %v329_v37, 0.0 }
 0x185   :  { %v331_v22 = vpop.f32.mrf.mxu1 }
 0x186   :  { %v332_v35 = vadd.f32 %v331_v22, %v260_v28 }
 0x188   :  { %v347_v41 = vmax.f32 %v332_v35, 0.0 }
 0x18d   :  { %v334_v23 = vpop.f32.mrf.mxu1 }
 0x18e   :  { %v335_v33 = vadd.f32 %v334_v23, %v265_v27 }
 0x190   :  { %v348_v38 = vmax.f32 %v335_v33, 0.0 }
 0x195   :  { %v337_v26 = vpop.f32.mrf.mxu1 }
 0x196   :  { %v338_v30 = vadd.f32 %v337_v26, %v270_v25 }
 0x198   :  { %v349_v36 = vmax.f32 %v338_v30, 0.0 }
 0x19d   :  { %v340_v29 = vpop.f32.mrf.mxu1 }
 0x19e   :  { %v341_v31 = vadd.f32 %v340_v29, %v275_v24 }
 0x1a0   :  { %v350_v34 = vmax.f32 %v341_v31, 0.0 }
 0x1a2   :  { %369 = vmatpush.msrb.mxu2 %v350_v34 }
 0x1a4   :  { %370 = vmatpush.msrb.mxu2 %v349_v36 }
 0x1a6   :  { %371 = vmatpush.msrb.mxu2 %v348_v38 }
 0x1a8   :  { %372 = vmatpush.msrb.mxu2 %v347_v41 }
 0x1aa   :  { %373 = vmatpush.msrb.mxu2 %v346_v44 }
 0x1ac   :  { %374 = vmatpush.msrb.mxu2 %v345_v47 }
 0x1ae   :  { %375 = vmatpush.msrb.mxu2 %v344_v48 }
 0x1b0   :  { %376 = vmatpush.msrb.mxu2 %v343_v49 }
 0x1b1   :  { %452 = vmatmul.msk.f32.vlgmr.msrb.gmra.mxu2 %vm277_vm1, %v351_v50 }
 0x234   :  { %v378_v52 = vpop.f32.mrf.mxu2 }
 0x235   :  { %v379_v53 = vadd.f32 %v378_v52, %v356_v51 }
 0x237   :  { %v381_v54 = vmul.f32 5.0, %v379_v53  ;;  %403 = vst [vmem:[#allocation2] sm:$0xe0] %v379_v53 }
 0x239   :  { %v383_v55 = vsel %vm382_vm2, %v381_v54, -inf }
 0x23a   :  { %v384_v56 = vrot.slane %v383_v55, 4 }
 0x23c   :  { %v385_v57 = vmax.f32 %v383_v55, %v384_v56 }
 0x23e   :  { %v386_v58 = vrot.slane %v385_v57, 2 }
 0x240   :  { %v387_v59 = vmax.f32 %v385_v57, %v386_v58 }
 0x242   :  { %v388_v60 = vrot.slane %v387_v59, 1 }
 0x244   :  { %v389_v61 = vmax.f32 %v387_v59, %v388_v60 }
 0x246   :  { %v390_v62 = vsub.f32 %v381_v54, %v389_v61 }
 0x248   :  { %v391_v63 = vmul.f32 1.442695, %v390_v62 }
 0x24a   :  { %490 = vpow2.f32 %v391_v63 }
 0x250   :  { %v491_v0 = vpop.eup %490 }
 0x251   :  { %v393_v1 = vsel %vm382_vm2, %v491_v0, 0.0 }
 0x252   :  { %v394_v2 = vrot.slane %v393_v1, 4 }
 0x254   :  { %v395_v3 = vadd.f32 %v394_v2, %v393_v1 }
 0x256   :  { %v396_v4 = vrot.slane %v395_v3, 2 }
 0x258   :  { %v397_v5 = vadd.f32 %v396_v4, %v395_v3 }
 0x25a   :  { %v398_v6 = vrot.slane %v397_v5, 1 }
 0x25c   :  { %v399_v7 = vadd.f32 %v398_v6, %v397_v5 }
 0x25e   :  { %492 = vrcp.f32 %v399_v7 }
 0x264   :  { %v493_v8 = vpop.eup %492 }
 0x265   :  { %v401_v9 = vmul.f32 %v493_v8, %v491_v0 }
 0x267   :  { %402 = vst [vmem:[#allocation2] sm:$0x1f] %v401_v9 }
 0x268   :  { %414 = dma.vmem_to_hbm [thread:$0]  %s410_s23, 128, %s412_s26, [#allocation3]  }
 0x269   :  { %518 = dma.done.wait [#allocation3], 128  }
 0x26a   :  { %519 = vsyncadd [#allocation3], 4294967168 }
 0x26b   :  { %419 = vsyncpa [#allocation3], 1 }

</bundles_post_ra>
